<compile_context>
chip_gen: v7x
topology: tpu7x:2x2x1
jax: 0.10.0
libtpu: 0.0.40
codegen_flags: <defaults>
</compile_context>

<pallas_src>
import functools
import math

import jax
import jax.numpy as jnp
from jax.experimental import pallas as pl
from jax.experimental.pallas import tpu as pltpu


def _arcface_kernel(x_ref, w_ref, lb_ref, o_ref, *, s, cos_m, sin_m, th, mm,
                    easy_margin, ls_eps, out_features, tile_c):
    x = x_ref[...]              # (B, D)       input dtype (bf16 runs MXU at full rate)
    w = w_ref[...]              # (D, TILE_C)  streamed W tile
    lb = lb_ref[...]            # (B, 1) int32 labels (resident)

    # Inverse L2 norms in f32.  Clamp the *squared* norm at 1e-24 to preserve
    # F.normalize's clamp(norm, 1e-12) semantics.  rsqrt -> EUP slot.
    xf = x.astype(jnp.float32)
    wf = w.astype(jnp.float32)
    inv_xn = jax.lax.rsqrt(
        jnp.maximum(jnp.sum(xf * xf, axis=1, keepdims=True), 1e-24))   # (B, 1)
    inv_wn = jax.lax.rsqrt(
        jnp.maximum(jnp.sum(wf * wf, axis=0, keepdims=True), 1e-24))   # (1, TILE_C)

    # Raw (un-normalized) dot products on the MXU; the normalization is folded
    # into the small (B, TILE_C) epilogue instead of rescaling x and W.
    raw = jnp.dot(x, w, preferred_element_type=jnp.float32)            # (B, TILE_C)
    cosine = raw * inv_xn * inv_wn

    # ArcFace margin: phi = cos(theta + m).  (Clamp under the sqrt to avoid a
    # NaN when rounding pushes |cosine| infinitesimally above 1.)
    sine = jnp.sqrt(jnp.maximum(1.0 - cosine * cosine, 0.0))
    phi = cosine * cos_m - sine * sin_m
    if easy_margin:
        phi = jnp.where(cosine > 0.0, phi, cosine)
    else:
        phi = jnp.where(cosine > th, phi, cosine - mm)

    # One-hot scatter as a fused select against the global column index.
    col = tile_c * pl.program_id(0) + jax.lax.broadcasted_iota(
        jnp.int32, cosine.shape, 1)
    is_target = col == lb                                              # (B, TILE_C)
    if ls_eps > 0.0:
        one_hot = jnp.where(is_target, 1.0 - ls_eps, 0.0) + (ls_eps / out_features)
        out = one_hot * phi + (1.0 - one_hot) * cosine
    else:
        out = jnp.where(is_target, phi, cosine)

    o_ref[...] = (s * out).astype(o_ref.dtype)


def arcface_forward(x, weight, label, *, s=30.0, m=0.3, easy_margin=False,
                    ls_eps=0.0, tile_c=512):
    """ArcFace logits.

    x:      (B, in_features)
    weight: (out_features, in_features)   -- PyTorch layout
    label:  (B,) integer class ids
    returns (B, out_features) float32 scaled, margin-adjusted logits.
    """
    B, D = x.shape
    C, D2 = weight.shape
    assert D == D2, "weight must be (out_features, in_features)"
    assert label.shape[0] == B

    # Tile the class dimension; lane-dense (multiple of 128) when gridded,
    # single full-width tile for small C.
    tc = min(int(tile_c), C)
    if tc < C:
        assert tc % 128 == 0, "tile_c must be a multiple of 128 when C is tiled"
    num_tiles = pl.cdiv(C, tc)
    c_pad = num_tiles * tc

    # One-time layout transpose (done by XLA outside the kernel) so the kernel
    # runs a plain (B,D)x(D,TILE_C) MXU matmul with lane-dense W/output tiles.
    wt = weight.T                                   # (D, C)
    if c_pad != C:
        wt = jnp.pad(wt, ((0, 0), (0, c_pad - C)))  # zero cols -> cosine 0, never a target
    lb2 = label.reshape(B, 1).astype(jnp.int32)

    kernel = functools.partial(
        _arcface_kernel,
        s=float(s), cos_m=math.cos(m), sin_m=math.sin(m),
        th=math.cos(math.pi - m), mm=math.sin(math.pi - m) * m,
        easy_margin=bool(easy_margin), ls_eps=float(ls_eps),
        out_features=int(C), tile_c=int(tc))

    out = pl.pallas_call(
        kernel,
        out_shape=jax.ShapeDtypeStruct((B, c_pad), jnp.float32),
        grid_spec=pltpu.PrefetchScalarGridSpec(
            num_scalar_prefetch=0,
            grid=(num_tiles,),
            in_specs=[
                pl.BlockSpec((B, D), lambda j: (0, 0)),   # x resident across C tiles
                pl.BlockSpec((D, tc), lambda j: (0, j)),  # stream W (double-buffered DMA)
                pl.BlockSpec((B, 1), lambda j: (0, 0)),   # labels resident
            ],
            out_specs=pl.BlockSpec((B, tc), lambda j: (0, j)),
        ),
        compiler_params=pltpu.CompilerParams(
            # Class tiles are independent -> megacore-parallel on v7x.
            dimension_semantics=("parallel",),
            # NOTE: for production class counts raise vmem_limit_bytes and
            # tile_c on v5e/v6e (128 MiB VMEM); keep tiles ~half that on v7x
            # (64 MiB VMEM per TensorCore).
        ),
    )(x, wt, lb2)

    if c_pad != C:
        out = out[:, :C]
    return out


if __name__ == "__main__":
    key = jax.random.PRNGKey(0)
    kx, kw, kl = jax.random.split(key, 3)

    B, in_features, out_features = 8, 32, 16
    s, m = 30.0, 0.3

    x = jax.random.normal(kx, (B, in_features), dtype=jnp.float32)

    # Xavier-uniform init like the PyTorch module: U(-a, a), a = sqrt(6/(fan_in+fan_out)).
    limit = math.sqrt(6.0 / (in_features + out_features))
    W = jax.random.uniform(kw, (out_features, in_features), dtype=jnp.float32,
                           minval=-limit, maxval=limit)

    lb = jax.random.randint(kl, (B,), 0, out_features, dtype=jnp.int32)

    out = arcface_forward(x, W, lb, s=s, m=m)
    jax.block_until_ready(out)

    # Pure-JAX reference of the module's forward pass.
    xn = x / jnp.maximum(jnp.linalg.norm(x, axis=1, keepdims=True), 1e-12)
    wn = W / jnp.maximum(jnp.linalg.norm(W, axis=1, keepdims=True), 1e-12)
    cosine = jnp.dot(xn, wn.T, precision=jax.lax.Precision.HIGHEST)
    sine = jnp.sqrt(jnp.maximum(1.0 - cosine * cosine, 0.0))
    cos_m, sin_m = math.cos(m), math.sin(m)
    th, mm = math.cos(math.pi - m), math.sin(math.pi - m) * m
    phi = jnp.where(cosine > th, cosine * cos_m - sine * sin_m, cosine - mm)
    one_hot = jax.nn.one_hot(lb, out_features, dtype=cosine.dtype)
    ref = s * (one_hot * phi + (1.0 - one_hot) * cosine)

    err = float(jnp.max(jnp.abs(out - ref)))
    assert jnp.allclose(out, ref, atol=1e-3, rtol=1e-3), f"max abs err {err}"

    # NOTE: the module's CrossEntropyLoss member is unused in forward(); the
    # forward returns raw scaled logits, which is what this kernel produces.
    print("KERNEL_OK")
</pallas_src>

<mosaic_0001>
module attributes {stable_mosaic.version = 11 : i64} {
  func.func @_arcface_kernel(%arg0: i32, %arg1: memref<8x32xf32, #tpu.memory_space<vmem>>, %arg2: memref<32x16xf32, #tpu.memory_space<vmem>>, %arg3: memref<8x1xi32, #tpu.memory_space<vmem>>, %arg4: memref<8x16xf32, #tpu.memory_space<vmem>>) attributes {dimension_semantics = [#tpu.dimension_semantics<parallel>], iteration_bounds = array<i64: 1>, scalar_prefetch = 0 : i64, scratch_operands = 0 : i64, tpu.core_type = #tpu.core_type<tc>, window_params = [{pipeline_mode = #tpu.pipeline_mode<synchronous>, transform_indices = @transform_0, window_bounds = array<i64: 8, 32>}, {transform_indices = @transform_1, window_bounds = array<i64: 32, 16>}, {pipeline_mode = #tpu.pipeline_mode<synchronous>, transform_indices = @transform_2, window_bounds = array<i64: 8, 1>}, {transform_indices = @transform_3, window_bounds = array<i64: 8, 16>}]} {
    %c0 = arith.constant 0 : index
    %c0_0 = arith.constant 0 : index
    %0 = vector.load %arg1[%c0, %c0_0] : memref<8x32xf32, #tpu.memory_space<vmem>>, vector<8x32xf32>
    %c0_1 = arith.constant 0 : index
    %c0_2 = arith.constant 0 : index
    %1 = vector.load %arg2[%c0_1, %c0_2] : memref<32x16xf32, #tpu.memory_space<vmem>>, vector<32x16xf32>
    %c0_3 = arith.constant 0 : index
    %c0_4 = arith.constant 0 : index
    %2 = vector.load %arg3[%c0_3, %c0_4] : memref<8x1xi32, #tpu.memory_space<vmem>>, vector<8x1xi32>
    %3 = arith.mulf %0, %0 : vector<8x32xf32>
    %cst = arith.constant dense<0.000000e+00> : vector<8xf32>
    %4 = vector.multi_reduction <add>, %3, %cst [1] : vector<8x32xf32> to vector<8xf32>
    %5 = vector.shape_cast %4 : vector<8xf32> to vector<8x1xf32>
    %cst_5 = arith.constant 1.000000e-24 : f32
    %6 = vector.broadcast %cst_5 : f32 to vector<8x1xf32>
    %7 = arith.maximumf %5, %6 : vector<8x1xf32>
    %8 = math.rsqrt %7 : vector<8x1xf32>
    %9 = arith.mulf %1, %1 : vector<32x16xf32>
    %cst_6 = arith.constant dense<0.000000e+00> : vector<16xf32>
    %10 = vector.multi_reduction <add>, %9, %cst_6 [0] : vector<32x16xf32> to vector<16xf32>
    %11 = vector.shape_cast %10 : vector<16xf32> to vector<1x16xf32>
    %cst_7 = arith.constant 1.000000e-24 : f32
    %12 = vector.broadcast %cst_7 : f32 to vector<1x16xf32>
    %13 = arith.maximumf %11, %12 : vector<1x16xf32>
    %14 = math.rsqrt %13 : vector<1x16xf32>
    %cst_8 = arith.constant dense<0.000000e+00> : vector<8x16xf32>
    %15 = tpu.matmul %0, %1, %cst_8 {dimension_numbers = #tpu.dot_dimension_numbers<[1], [0], [0], [1], [0, 0, 1, 1], [], []>} : vector<8x32xf32>, vector<32x16xf32>, vector<8x16xf32> -> vector<8x16xf32>
    %16 = vector.broadcast %8 : vector<8x1xf32> to vector<8x16xf32>
    %17 = arith.mulf %15, %16 : vector<8x16xf32>
    %18 = vector.broadcast %14 : vector<1x16xf32> to vector<8x16xf32>
    %19 = arith.mulf %17, %18 : vector<8x16xf32>
    %20 = arith.mulf %19, %19 : vector<8x16xf32>
    %cst_9 = arith.constant 1.000000e+00 : f32
    %21 = vector.broadcast %cst_9 : f32 to vector<8x16xf32>
    %22 = arith.subf %21, %20 : vector<8x16xf32>
    %cst_10 = arith.constant 0.000000e+00 : f32
    %23 = vector.broadcast %cst_10 : f32 to vector<8x16xf32>
    %24 = arith.maximumf %22, %23 : vector<8x16xf32>
    %25 = math.sqrt %24 : vector<8x16xf32>
    %cst_11 = arith.constant 0.955336511 : f32
    %26 = vector.broadcast %cst_11 : f32 to vector<8x16xf32>
    %27 = arith.mulf %19, %26 : vector<8x16xf32>
    %cst_12 = arith.constant 0.295520216 : f32
    %28 = vector.broadcast %cst_12 : f32 to vector<8x16xf32>
    %29 = arith.mulf %25, %28 : vector<8x16xf32>
    %30 = arith.subf %27, %29 : vector<8x16xf32>
    %cst_13 = arith.constant -0.955336511 : f32
    %31 = vector.broadcast %cst_13 : f32 to vector<8x16xf32>
    %32 = arith.cmpf ogt, %19, %31 : vector<8x16xf32>
    %cst_14 = arith.constant 0.0886560603 : f32
    %33 = vector.broadcast %cst_14 : f32 to vector<8x16xf32>
    %34 = arith.subf %19, %33 : vector<8x16xf32>
    %35 = arith.select %32, %30, %34 : vector<8x16xi1>, vector<8x16xf32>
    %c16_i32 = arith.constant 16 : i32
    %36 = arith.muli %c16_i32, %arg0 : i32
    %37 = tpu.iota {dimensions = array<i32: 1>} : vector<8x16xi32>
    %38 = vector.broadcast %36 : i32 to vector<8x16xi32>
    %39 = arith.addi %38, %37 : vector<8x16xi32>
    %40 = vector.broadcast %2 : vector<8x1xi32> to vector<8x16xi32>
    %41 = arith.cmpi eq, %39, %40 : vector<8x16xi32>
    %42 = arith.select %41, %35, %19 : vector<8x16xi1>, vector<8x16xf32>
    %cst_15 = arith.constant 3.000000e+01 : f32
    %43 = vector.broadcast %cst_15 : f32 to vector<8x16xf32>
    %44 = arith.mulf %43, %42 : vector<8x16xf32>
    %c0_16 = arith.constant 0 : index
    %c0_17 = arith.constant 0 : index
    %45 = vector.load %arg4[%c0_16, %c0_17] : memref<8x16xf32, #tpu.memory_space<vmem>>, vector<8x16xf32>
    tpu.vector_store %arg4[%c0_16, %c0_17], %44 {strides = array<i32>} : memref<8x16xf32, #tpu.memory_space<vmem>>, vector<8x16xf32>,
    return
  }
  func.func @transform_0(%arg0: i32) -> (i32, i32) {
    %c0_i32 = arith.constant 0 : i32
    %c0_i32_0 = arith.constant 0 : i32
    %c0_i32_1 = arith.constant 0 : i32
    return %c0_i32, %c0_i32_0 : i32, i32
  }
  func.func @transform_1(%arg0: i32) -> (i32, i32) {
    %c0_i32 = arith.constant 0 : i32
    %c0_i32_0 = arith.constant 0 : i32
    return %c0_i32, %arg0 : i32, i32
  }
  func.func @transform_2(%arg0: i32) -> (i32, i32) {
    %c0_i32 = arith.constant 0 : i32
    %c0_i32_0 = arith.constant 0 : i32
    %c0_i32_1 = arith.constant 0 : i32
    return %c0_i32, %c0_i32_0 : i32, i32
  }
  func.func @transform_3(%arg0: i32) -> (i32, i32) {
    %c0_i32 = arith.constant 0 : i32
    %c0_i32_0 = arith.constant 0 : i32
    return %c0_i32, %arg0 : i32, i32
  }
}

</mosaic_0001>

<bundles_post_ra>
// kernel: tpu_custom_call.1
= control target key start
LH: loop header
LB: loop body
LE: loop exit
PB: predicated region body
PF: predicated region fallthrough
CT: control target
= control target key end

     0   :  { %vm32_vm0 = vcmask 130048   ;;  %v225_v3 = vmov 0.0|0.0   ;;  %s285_s0 = inlined_call_operand.vmem [shape: f32[8,32], index: 0, kind: input, shape index: {}]   ;;  %s286_s1 = inlined_call_operand.vmem [shape: f32[32,16], index: 1, kind: input, shape index: {}]   ;;  %s287_s2 = inlined_call_operand.vmem [shape: s32[8,1], index: 2, kind: input, shape index: {}]   ;;  %s288_s3 = inlined_call_operand.hbm [shape: f32[8,16], index: 3, kind: output, shape index: {}]  }
   0x1   :  { %v16_v0 = vld [vmem:[%s286_s1] sm:$0xff]  ;;  %v17_v1 = vld [vmem:[%s286_s1 + $0x8] sm:$0xff]  ;;  %v18_v2 = vld [vmem:[%s286_s1 + $0x10] sm:$0xff]  ;;  %183 = vmatprep.subr.bf16.mxu0 %v225_v3 }
   0x2   :  { %v28_v4 = vmul.f32 %v16_v0, %v16_v0  ;;  %v29_v5 = vmul.f32 %v17_v1, %v17_v1  ;;  %v184_v6 = vpack.c.bf16 %v17_v1, %v16_v0  ;;  %v19_v7 = vld [vmem:[%s286_s1 + $0x18] sm:$0xff]  ;;  %v30_v8 = vmul.f32 %v18_v2, %v18_v2  ;;  %v15_v11 = vld [vmem:[%s285_s0] sm:$0xff] }
   0x3   :  { %v31_v9 = vmul.f32 %v19_v7, %v19_v7  ;;  %v187_v10 = vpack.c.bf16 %v19_v7, %v18_v2 }
   0x4   :  { %8 = vsyncpa [#allocation3], 0  ;;  %v33_v12 = vsel %vm32_vm0, %v28_v4, 0.0  ;;  %v34_v13 = vsel %vm32_vm0, %v29_v5, 0.0  ;;  %185 = vmatpush3.bf16.msra.mxu0 %v184_v6  ;;  %v36_v14 = vsel %vm32_vm0, %v30_v8, 0.0  ;;  %vm226_vm1 = vmmov 0  }
   0x5   :  { %v227_v15 = vmov 0.0   ;;  %v21_v16 = vmul.f32 %v15_v11, %v15_v11  ;;  %v35_v17 = vadd.f32 %v34_v13, %v33_v12  ;;  %186 = vmatprep.subr.bf16.mxu0 %v225_v3  ;;  %vm22_vm2 = vcmask 261120   ;;  %v20_v23 = vld [vmem:[%s287_s2] sm:$0xff]  ;;  %s229_s2 = smov [#allocation2]  }
   0x6   :  { %180 = vmatprep.mubr.msk.f32.mxu0 %vm226_vm1, %v227_v15  ;;  %v38_v18 = vsel %vm32_vm0, %v31_v9, 0.0  ;;  %v228_v20 = vmov 0   ;;  %v140_v42 = vlaneseq  ;;  %s157_s22 = sshll.u32 %s229_s2, 4  ;;  %s158_s22 = int_to_ptr.vmem [resolvable:$true] %s157_s22 }
   0x7   :  { %v23_v19 = vsel %vm22_vm2, %v21_v16, 0.0  ;;  %194 = vset.pattern.permute.xlu0 %v228_v20  ;;  %v37_v21 = vadd.f32 %v36_v14, %v35_v17  ;;  %s201_s23 = scalar_lea.vmem %s158_s22, 128  ;;  %p206_p1 = scmp.lt.s32.totalorder %s158_s22, %s158_s22 }
   0x8   :  { %24 = vadd.xlane.f32.xlu0 %v23_v19  ;;  %188 = vmatpush3.bf16.msra.mxu0 %v187_v10  ;;  %v141_v47 = vand.u32 127, %v140_v42  ;;  %p202_p0 = scmp.ne.s32.totalorder %s158_s22, %s201_s23  ;;  %p207_p2 = scmp.lt.s32.totalorder %s201_s23, %s201_s23 }
   0x9   :  { %v39_v22 = vadd.f32 %v38_v18, %v37_v21 }
   0xa   :  { %p208_p3 = por %p207_p2, %p206_p1 }
   0xb   :  { %181 = vmatmul.mubr.msk.f32.vlgmr.msra.gmra.mrb[0].mxu0 %vm22_vm2, %v15_v11  ;;  %v40_v24 = vrot.slane %v39_v22, 4 }
   0xc   :  { %p209_p4 = pnand %p208_p3, %p202_p0 }
   0xd   :  { %v41_v25 = vadd.f32 %v40_v24, %v39_v22 }
   0xf   :  { %v42_v26 = vrot.slane %v41_v25, 2 }
  0x11   :  { %v43_v27 = vadd.f32 %v42_v26, %v41_v25 }
  0x13   :  { %v44_v28 = vrot.slane %v43_v27, 1 }
  0x15   :  { %v45_v30 = vadd.f32 %v44_v28, %v43_v27 }
  0x17   :  { %v46_v32 = vmax.f32 %v45_v30, 1e-24 }
  0x1e   :  { %145 = vperm.xlu0 %194, %v20_v23  }
  0x95   :  { %v25_v29 = vpop.xlane.xlu0 %24 }
  0x96   :  { %v26_v31 = vmax.f32 %v25_v29, 1e-24 }
  0x98   :  { %195 = vrsqrt.f32 %v26_v31 }
  0x99   :  { %197 = vrsqrt.f32 %v46_v32 }
  0x9d   :  { %v146_v49 = vpop.permute.xlu0 %145 }
  0x9e   :  { %vm147_vm5 = vcmp.eq.s32.totalorder %v141_v47, %v146_v49 }
  0xa2   :  { %v196_v33 = vpop.eup %195 }
  0xa3   :  { %v198_v34 = vpop.eup %197 }
  0xde   :  { %v117_v35 = vpop.f32.mrb[0].mxu0 }
  0xdf   :  { %v121_v36 = vmul.f32 %v196_v33, %v117_v35  ;;  %v182_v37 = vpop.f32.mrb[1].mxu0 }
  0xe1   :  { %v122_v38 = vmul.f32 %v198_v34, %v121_v36 }
  0xe3   :  { %v123_v39 = vmul.f32 %v122_v38, %v122_v38  ;;  %v133_v50 = vmul.f32 0.9553365, %v122_v38  ;;  %v166_v53 = vadd.f32 -0.08865606, %v122_v38  ;;  %vm136_vm6 = vcmp.gt.f32.partialorder %v122_v38, -0.9553365 }
  0xe5   :  { %v124_v40 = vsub.f32 1.0, %v123_v39 }
  0xe7   :  { %v125_v41 = vmax.f32 %v124_v40, 0.0 }
  0xe9   :  { %199 = vrsqrt.f32 %v125_v41  ;;  %vm128_vm3 = vcmp.eq.f32.partialorder %v125_v41, inf  ;;  %v131_v45 = vand.u32 2147483648, %v125_v41  ;;  %vm130_vm4 = vcmp.eq.f32.partialorder %v125_v41, 0.0 }
  0xf3   :  { %v200_v43 = vpop.eup %199 }
  0xf4   :  { %v127_v44 = vmul.f32 %v200_v43, %v125_v41 }
  0xf6   :  { %v129_v46 = vsel %vm128_vm3, %v125_v41, %v127_v44 }
  0xf7   :  { %v132_v48 = vsel %vm130_vm4, %v131_v45, %v129_v46 }
  0xf8   :  { %v134_v51 = vmul.f32 0.29552022, %v132_v48 }
  0xfa   :  { %v135_v52 = vsub.f32 %v133_v50, %v134_v51 }
  0xfc   :  { %v138_v54 = vsel %vm136_vm6, %v135_v52, %v166_v53 }
  0xfd   :  { %v148_v55 = vsel %vm147_vm5, %v138_v54, %v122_v38 }
  0xfe   :  { %v149_v56 = vmul.f32 30.0, %v148_v55 }
 0x100   :  { %150 = vst.msk [vmem:[#allocation2] sm:$0xff] %vm32_vm0, %v149_v56 }
 0x101   :  { %212 = shalt.err (!%p209_p4)
}
 0x102   :  { %s213_s26 = scalar_lea.hbm %s288_s3, 128 }
 0x103   :  { %p214_p5 = scmp.ne.s32.totalorder %s288_s3, %s213_s26  ;;  %p217_p6 = scmp.lt.u32.totalorder %s213_s26, %s288_s3 }
 0x105   :  { %p219_p7 = pnand %p217_p6, %p214_p5 }
 0x107   :  { %222 = shalt.err (!%p219_p7)
}
 0x108   :  { %160 = dma.vmem_to_hbm [thread:$0]  %s158_s22, 128, %s288_s3, [#allocation3]  }
 0x109   :  { %223 = dma.done.wait [#allocation3], 128  }
 0x10a   :  { %224 = vsyncadd [#allocation3], 4294967168 }
 0x10b   :  { %164 = vsyncpa [#allocation3], 1 }

</bundles_post_ra>
